<compile_context>
chip_gen: v6e
topology: v6e:2x2x1
jax: 0.10.0
libtpu: 0.0.40
codegen_flags: <defaults>
</compile_context>

<pallas_src>
import functools
import math

import jax
import jax.numpy as jnp
from jax import lax
from jax.experimental import pallas as pl
from jax.experimental.pallas import tpu as pltpu

_LANES = 128
_SUBLANES = 8

# Rows (of 128 lanes) processed per inner-loop iteration.  Keeps per-chunk f32
# temporaries at ~1.5 MiB regardless of how big the DMA tile is.
_CHUNK_ROWS = 512

# Budget for the double-buffered (input + target) HBM->VMEM streams.
# 24 MiB => 8192-row f32 tiles (12 MiB/step): ~3.8us DMA on v7x, ~9us on v6e,
# ~15us on v5e, so the ~0.35us per-step pipeline overhead is <10% everywhere.
_STREAM_BUDGET_BYTES = 24 << 20


def _weighted_mse_kernel(x_ref, tgt_ref, out_ref, acc_ref, *, rows, tile_rows,
                         chunk_size, n_chunks, num_tiles, tiles_per_split):
    # x_ref:   (1, tile_rows, 128)      input tile for batch b
    # tgt_ref: (1, 2, tile_rows, 128)   [real_target ; weight] tile for batch b
    # out_ref: (1, 1, 1, 128)           per-(split, batch) lane-parallel partials
    # acc_ref: (1, 128) f32             VMEM accumulator, resident across t-axis
    s = pl.program_id(0)          # row-split index (size 1 unless B == 1)
    t = pl.program_id(2)          # tile index within this split (reduction axis)

    @pl.when(t == 0)
    def _():
        acc_ref[...] = jnp.zeros_like(acc_ref)

    global_tile = s * tiles_per_split + t
    tile_row0 = global_tile * tile_rows

    # Splits may have fewer real tiles than the (rectangular) grid extent; the
    # index_map clamps the block index and we simply skip the duplicate work.
    @pl.when(global_tile < num_tiles)
    def _():
        # Hoisted out of the chunk loop (loop-invariant broadcast).
        row_iota = lax.broadcasted_iota(jnp.int32, (chunk_size, _LANES), 0)

        def chunk_body(c, carry):
            r0 = pl.multiple_of(c * chunk_size, chunk_size)
            x = x_ref[0, pl.ds(r0, chunk_size), :].astype(jnp.float32)
            real_t = tgt_ref[0, 0, pl.ds(r0, chunk_size), :].astype(jnp.float32)
            weight = tgt_ref[0, 1, pl.ds(r0, chunk_size), :].astype(jnp.float32)

            diff = x - real_t
            contrib = weight * diff * diff

            # Mask rows past the true end of the array: those come from the
            # partial last block's (undefined) padding.  jnp.where is a select,
            # so garbage (even NaN/Inf) in the masked lanes cannot leak.
            valid = rows - (tile_row0 + c * chunk_size)
            contrib = jnp.where(row_iota < valid, contrib, 0.0)

            # Sublane reduce into the tiny accumulator (XLU/VPU have slack in
            # this HBM-bound kernel).
            acc_ref[...] += jnp.sum(contrib, axis=0, keepdims=True)
            return carry

        lax.fori_loop(0, n_chunks, chunk_body, 0)

    @pl.when(t == tiles_per_split - 1)
    def _():
        out_ref[0, 0] = acc_ref[...]   # finalize is a plain (1, 128) copy


def weighted_target_loss(inp, target, *, max_tile_rows=None,
                         chunk_rows=_CHUNK_ROWS,
                         stream_budget_bytes=_STREAM_BUDGET_BYTES):
    """inp: (B, *feat); target: (B, 2, *feat). Returns scalar f32 loss.

    max_tile_rows / chunk_rows are tuning/testing knobs; the defaults derive
    the tile size from a VMEM stream budget.
    """
    B = inp.shape[0]
    assert target.shape[0] == B and target.shape[1] == 2
    assert target.shape[2:] == inp.shape[1:]

    n = int(math.prod(inp.shape[1:])) if inp.ndim > 1 else 1

    x2d = inp.reshape(B, n)
    t3d = target.reshape(B, 2, n)

    # --- tiling knobs -------------------------------------------------------
    chunk_rows = max(_SUBLANES, (int(chunk_rows) // _SUBLANES) * _SUBLANES)
    if max_tile_rows is None:
        bytes_per_row = _LANES * (inp.dtype.itemsize + 2 * target.dtype.itemsize)
        max_tile_rows = stream_budget_bytes // (2 * bytes_per_row)
    max_tile_rows = max(chunk_rows, (int(max_tile_rows) // chunk_rows) * chunk_rows)

    # --- lane padding (only when n is not already 128-aligned) ---------------
    # Common case (n % 128 == 0): zero-copy reshape, no jnp.pad.  Padded
    # weights are zero, so padded elements contribute nothing to the sum.
    n_pad = ((n + _LANES - 1) // _LANES) * _LANES
    if n_pad != n:
        x2d = jnp.pad(x2d, ((0, 0), (0, n_pad - n)))
        t3d = jnp.pad(t3d, ((0, 0), (0, 0), (0, n_pad - n)))
    rows = n_pad // _LANES

    x3 = x2d.reshape(B, rows, _LANES)
    t4 = t3d.reshape(B, 2, rows, _LANES)

    # --- tile / chunk selection ----------------------------------------------
    if rows <= chunk_rows:
        tile_rows = rows           # block == full rows dim: always a legal block
        chunk_size = rows
    else:
        tile_rows = min(max_tile_rows, rows)
        tile_rows = (tile_rows // chunk_rows) * chunk_rows   # multiple of chunk
        chunk_size = chunk_rows
    n_chunks = tile_rows // chunk_size
    num_tiles = pl.cdiv(rows, tile_rows)

    # v7x: both TensorCores get work even for single-batch calls by splitting
    # the row range across a leading "parallel" axis.  Harmless on v5e/v6e.
    n_split = 2 if (B == 1 and num_tiles >= 2) else 1
    tiles_per_split = pl.cdiv(num_tiles, n_split)

    if n_split == 1:
        x_map = lambda s, b, t: (b, t, 0)
        tgt_map = lambda s, b, t: (b, 0, t, 0)
    else:
        def _tile_idx(s, t):
            # Clamp so a split with fewer real tiles never requests an
            # out-of-range block (the kernel skips the duplicate via pl.when).
            return jnp.minimum(s * tiles_per_split + t, num_tiles - 1)
        x_map = lambda s, b, t: (b, _tile_idx(s, t), 0)
        tgt_map = lambda s, b, t: (b, 0, _tile_idx(s, t), 0)

    kernel = functools.partial(
        _weighted_mse_kernel,
        rows=rows, tile_rows=tile_rows, chunk_size=chunk_size,
        n_chunks=n_chunks, num_tiles=num_tiles, tiles_per_split=tiles_per_split)

    tile_bytes = tile_rows * _LANES * (inp.dtype.itemsize + 2 * target.dtype.itemsize)
    vmem_limit = max(32 << 20, 2 * tile_bytes + (12 << 20))   # <= 36 MiB at defaults

    partials = pl.pallas_call(
        kernel,
        out_shape=jax.ShapeDtypeStruct((n_split, B, 1, _LANES), jnp.float32),
        grid_spec=pltpu.PrefetchScalarGridSpec(
            num_scalar_prefetch=0,
            grid=(n_split, B, tiles_per_split),
            in_specs=[
                pl.BlockSpec((1, tile_rows, _LANES), x_map),
                pl.BlockSpec((1, 2, tile_rows, _LANES), tgt_map),
            ],
            out_specs=pl.BlockSpec((1, 1, 1, _LANES), lambda s, b, t: (s, b, 0, 0)),
            scratch_shapes=[pltpu.VMEM((1, _LANES), jnp.float32)],
        ),
        compiler_params=pltpu.CompilerParams(
            # split + batch axes are independent per block -> parallel
            # (v7x megacore); the tile axis carries the accumulator -> arbitrary.
            dimension_semantics=("parallel", "parallel", "arbitrary"),
            vmem_limit_bytes=int(vmem_limit),
        ),
    )(x3, t4)

    # Mean over all elements of `input` (original, unpadded count).
    return jnp.sum(partials) / jnp.float32(B * n)


def _reference(inp, target):
    real_target = target[:, 0]
    weight = target[:, 1]
    return jnp.mean(weight.astype(jnp.float32)
                    * (inp.astype(jnp.float32) - real_target.astype(jnp.float32)) ** 2)


if __name__ == "__main__":
    key = jax.random.PRNGKey(0)

    def make_case(k, shape, dtype=jnp.float32):
        k1, k2, k3 = jax.random.split(k, 3)
        inp = jax.random.normal(k1, shape, dtype=jnp.float32).astype(dtype)
        real_t = jax.random.normal(k2, shape, dtype=jnp.float32).astype(dtype)
        w = jax.random.uniform(k3, shape, dtype=jnp.float32).astype(dtype)
        return inp, jnp.stack([real_t, w], axis=1)   # target: (B, 2, *feat)

    k1, k2, k3, k4 = jax.random.split(key, 4)

    # Case 1: module-default small shape, f32, single-tile fast path.
    inp, tgt = make_case(k1, (2, 4, 16, 16))
    loss = weighted_target_loss(inp, tgt)
    jax.block_until_ready(loss)
    ref = _reference(inp, tgt)
    assert jnp.allclose(loss, ref, rtol=1e-5, atol=1e-6), ("case1", loss, ref)

    # Case 2: B=1, n % 128 != 0 (minimal lane pad), multiple tiles, odd tile
    # count -> dual-core row split with clamped index_map + skip guard.
    inp, tgt = make_case(k2, (1, 13, 200))
    loss = weighted_target_loss(inp, tgt, max_tile_rows=8, chunk_rows=8)
    jax.block_until_ready(loss)
    ref = _reference(inp, tgt)
    assert jnp.allclose(loss, ref, rtol=1e-5, atol=1e-6), ("case2", loss, ref)

    # Case 3: multi-chunk tiles + partial last tile whose trailing chunk is
    # fully masked.
    inp, tgt = make_case(k3, (2, 40, 128))
    loss = weighted_target_loss(inp, tgt, max_tile_rows=16, chunk_rows=8)
    jax.block_until_ready(loss)
    ref = _reference(inp, tgt)
    assert jnp.allclose(loss, ref, rtol=1e-5, atol=1e-6), ("case3", loss, ref)

    # Case 4: bf16 inputs streamed in native dtype (no wrapper upcast).
    inp, tgt = make_case(k4, (2, 4, 32, 32), dtype=jnp.bfloat16)
    loss = weighted_target_loss(inp, tgt)
    jax.block_until_ready(loss)
    ref = _reference(inp, tgt)
    assert jnp.allclose(loss, ref, rtol=1e-4, atol=1e-5), ("case4", loss, ref)

    print("KERNEL_OK")
</pallas_src>

<mosaic_0001>
module attributes {stable_mosaic.version = 11 : i64} {
  func.func @_weighted_mse_kernel(%arg0: i32, %arg1: i32, %arg2: i32, %arg3: memref<1x8x128xf32, #tpu.memory_space<vmem>>, %arg4: memref<1x2x8x128xf32, #tpu.memory_space<vmem>>, %arg5: memref<1x1x1x128xf32, #tpu.memory_space<vmem>>, %arg6: memref<1x128xf32, #tpu.memory_space<vmem>>) attributes {dimension_semantics = [#tpu.dimension_semantics<parallel>, #tpu.dimension_semantics<parallel>, #tpu.dimension_semantics<arbitrary>], iteration_bounds = array<i64: 1, 2, 1>, scalar_prefetch = 0 : i64, scratch_operands = 1 : i64, tpu.core_type = #tpu.core_type<tc>, window_params = [{transform_indices = @transform_0, window_bounds = array<i64: 1, 8, 128>}, {transform_indices = @transform_1, window_bounds = array<i64: 1, 2, 8, 128>}, {transform_indices = @transform_2, window_bounds = array<i64: 1, 1, 1, 128>}]} {
    %c0_i32 = arith.constant 0 : i32
    %0 = arith.cmpi eq, %arg2, %c0_i32 : i32
    %1 = arith.extui %0 : i1 to i32
    %c0_i32_0 = arith.constant 0 : i32
    %2 = arith.cmpi ne, %1, %c0_i32_0 : i32
    scf.if %2 {
      %cst = arith.constant 0.000000e+00 : f32
      %12 = vector.broadcast %cst : f32 to vector<1x128xf32>
      %c0 = arith.constant 0 : index
      %c0_5 = arith.constant 0 : index
      %13 = vector.load %arg6[%c0, %c0_5] : memref<1x128xf32, #tpu.memory_space<vmem>>, vector<1x128xf32>
      tpu.vector_store %arg6[%c0, %c0_5], %12 {strides = array<i32>} : memref<1x128xf32, #tpu.memory_space<vmem>>, vector<1x128xf32>,
    } else {
    }
    %c1_i32 = arith.constant 1 : i32
    %3 = arith.muli %arg0, %c1_i32 : i32
    %4 = arith.addi %3, %arg2 : i32
    %c8_i32 = arith.constant 8 : i32
    %5 = arith.muli %4, %c8_i32 : i32
    %c1_i32_1 = arith.constant 1 : i32
    %6 = arith.cmpi slt, %4, %c1_i32_1 : i32
    %7 = arith.extui %6 : i1 to i32
    %c0_i32_2 = arith.constant 0 : i32
    %8 = arith.cmpi ne, %7, %c0_i32_2 : i32
    scf.if %8 {
      %12 = tpu.iota {dimensions = array<i32: 0>} : vector<8x128xi32>
      %c0_i32_5 = arith.constant 0 : i32
      %c8_i32_6 = arith.constant 8 : i32
      %13 = arith.muli %c0_i32_5, %c8_i32_6 : i32
      %14 = tpu.assume_multiple %13, 8 : i32
      %c0 = arith.constant 0 : index
      %15 = arith.index_cast %14 : i32 to index
      %c0_7 = arith.constant 0 : index
      %16 = vector.load %arg3[%c0, %15, %c0_7] : memref<1x8x128xf32, #tpu.memory_space<vmem>>, vector<1x8x128xf32>
      %17 = vector.shape_cast %16 : vector<1x8x128xf32> to vector<8x128xf32>
      %c0_8 = arith.constant 0 : index
      %c0_9 = arith.constant 0 : index
      %18 = arith.index_cast %14 : i32 to index
      %c0_10 = arith.constant 0 : index
      %19 = vector.load %arg4[%c0_8, %c0_9, %18, %c0_10] : memref<1x2x8x128xf32, #tpu.memory_space<vmem>>, vector<1x1x8x128xf32>
      %20 = vector.shape_cast %19 : vector<1x1x8x128xf32> to vector<8x128xf32>
      %c0_11 = arith.constant 0 : index
      %c1 = arith.constant 1 : index
      %21 = arith.index_cast %14 : i32 to index
      %c0_12 = arith.constant 0 : index
      %22 = vector.load %arg4[%c0_11, %c1, %21, %c0_12] : memref<1x2x8x128xf32, #tpu.memory_space<vmem>>, vector<1x1x8x128xf32>
      %23 = vector.shape_cast %22 : vector<1x1x8x128xf32> to vector<8x128xf32>
      %24 = arith.subf %17, %20 : vector<8x128xf32>
      %25 = arith.mulf %23, %24 : vector<8x128xf32>
      %26 = arith.mulf %25, %24 : vector<8x128xf32>
      %c8_i32_13 = arith.constant 8 : i32
      %27 = arith.muli %c0_i32_5, %c8_i32_13 : i32
      %28 = arith.addi %5, %27 : i32
      %c8_i32_14 = arith.constant 8 : i32
      %29 = arith.subi %c8_i32_14, %28 : i32
      %30 = vector.broadcast %29 : i32 to vector<8x128xi32>
      %31 = arith.cmpi slt, %12, %30 : vector<8x128xi32>
      %cst = arith.constant 0.000000e+00 : f32
      %32 = vector.broadcast %cst : f32 to vector<8x128xf32>
      %33 = arith.select %31, %26, %32 : vector<8x128xi1>, vector<8x128xf32>
      %c0_15 = arith.constant 0 : index
      %c0_16 = arith.constant 0 : index
      %34 = vector.load %arg6[%c0_15, %c0_16] : memref<1x128xf32, #tpu.memory_space<vmem>>, vector<1x128xf32>
      %cst_17 = arith.constant dense<0.000000e+00> : vector<128xf32>
      %35 = vector.multi_reduction <add>, %33, %cst_17 [0] : vector<8x128xf32> to vector<128xf32>
      %36 = vector.shape_cast %35 : vector<128xf32> to vector<1x128xf32>
      %37 = arith.addf %34, %36 : vector<1x128xf32>
      %c0_18 = arith.constant 0 : index
      %c0_19 = arith.constant 0 : index
      %38 = vector.load %arg6[%c0_18, %c0_19] : memref<1x128xf32, #tpu.memory_space<vmem>>, vector<1x128xf32>
      tpu.vector_store %arg6[%c0_18, %c0_19], %37 {strides = array<i32>} : memref<1x128xf32, #tpu.memory_space<vmem>>, vector<1x128xf32>,
      %c1_i32_20 = arith.constant 1 : i32
    } else {
    }
    %c0_i32_3 = arith.constant 0 : i32
    %9 = arith.cmpi eq, %arg2, %c0_i32_3 : i32
    %10 = arith.extui %9 : i1 to i32
    %c0_i32_4 = arith.constant 0 : i32
    %11 = arith.cmpi ne, %10, %c0_i32_4 : i32
    scf.if %11 {
      %c0 = arith.constant 0 : index
      %c0_5 = arith.constant 0 : index
      %12 = vector.load %arg6[%c0, %c0_5] : memref<1x128xf32, #tpu.memory_space<vmem>>, vector<1x128xf32>
      %c0_6 = arith.constant 0 : index
      %c0_7 = arith.constant 0 : index
      %c0_8 = arith.constant 0 : index
      %c0_9 = arith.constant 0 : index
      %13 = vector.load %arg5[%c0_6, %c0_7, %c0_8, %c0_9] : memref<1x1x1x128xf32, #tpu.memory_space<vmem>>, vector<1x1x1x128xf32>
      %14 = vector.shape_cast %13 : vector<1x1x1x128xf32> to vector<1x128xf32>
      %15 = vector.shape_cast %12 : vector<1x128xf32> to vector<1x1x1x128xf32>
      tpu.vector_store %arg5[%c0_6, %c0_7, %c0_8, %c0_9], %15 {strides = array<i32>} : memref<1x1x1x128xf32, #tpu.memory_space<vmem>>, vector<1x1x1x128xf32>,
    } else {
    }
    return
  }
  func.func @transform_0(%arg0: i32, %arg1: i32, %arg2: i32) -> (i32, i32, i32) {
    %c0_i32 = arith.constant 0 : i32
    %c0_i32_0 = arith.constant 0 : i32
    return %arg1, %arg2, %c0_i32 : i32, i32, i32
  }
  func.func @transform_1(%arg0: i32, %arg1: i32, %arg2: i32) -> (i32, i32, i32, i32) {
    %c0_i32 = arith.constant 0 : i32
    %c0_i32_0 = arith.constant 0 : i32
    %c0_i32_1 = arith.constant 0 : i32
    return %arg1, %c0_i32, %arg2, %c0_i32_0 : i32, i32, i32, i32
  }
  func.func @transform_2(%arg0: i32, %arg1: i32, %arg2: i32) -> (i32, i32, i32, i32) {
    %c0_i32 = arith.constant 0 : i32
    %c0_i32_0 = arith.constant 0 : i32
    %c0_i32_1 = arith.constant 0 : i32
    return %arg0, %arg1, %c0_i32, %c0_i32_0 : i32, i32, i32, i32
  }
}

</mosaic_0001>

<bundles_post_ra>
// kernel: tpu_custom_call.1
= control target key start
LH: loop header
LB: loop body
LE: loop exit
PB: predicated region body
PF: predicated region fallthrough
CT: control target
= control target key end

     0   :  { %7 = vsyncpa [#allocation4], 0  ;;  %s806_s0 = inlined_call_operand.hbm [shape: f32[2,8,128], index: 0, kind: input, shape index: {}]   ;;  %s807_s1 = inlined_call_operand.hbm [shape: f32[2,2,8,128], index: 1, kind: input, shape index: {}]   ;;  %s808_s2 = inlined_call_operand.hbm [shape: f32[1,2,1,128], index: 2, kind: output, shape index: {}]  }
   0x1   :  { %9 = vsyncpa [#allocation4 + $0x1], 0 }
   0x2   :  { %10 = vsyncpa [#allocation7], 0 }
   0x3   :  { %12 = vsyncpa [#allocation7 + $0x1], 0 }
   0x4   :  { %13 = vsyncpa [#allocation5], 0 }
   0x5   :  { %15 = vsyncpa [#allocation5 + $0x1], 0  ;;  %s635_s9 = smov 0   ;;  %s637_s10 = smov 0  }
   0x6   :  { %s639_s11 = smov 0   ;;  %s641_s12 = smov 0  }
   0x7   :  { %s643_s13 = smov 0   ;;  %s645_s14 = smov 0  }
   0x8 LB: > { %s385_s15 = sadd.s32 4294967295, %s612_s14   ;;  %s386_s16 = sadd.s32 4294967294, %s612_s14   ;;  %s612_s14 = sphi %s645_s14, %s21_s14   ;;  %s608_s13 = sphi %s643_s13, %s820_s13   ;;  %s604_s12 = sphi %s641_s12, %s819_s12   ;;  %s600_s11 = sphi %s639_s11, %s818_s11   ;;  %s596_s10 = sphi %s637_s10, %s817_s10   ;;  %s592_s9 = sphi %s635_s9, %s816_s9  }
   0x9   : > { %s36_s17 = sadd.s32 1, %s608_s13  ;;  %s49_s18 = sadd.s32 1, %s600_s11 }
   0xa   : > { %p38_p0 = scmp.ge.s32.totalorder %s36_s17, 2  ;;  %p56_p1 = scmp.ne.s32.totalorder %s600_s11, %s596_s10 }
   0xb   : > { %p57_p2 = scmp.eq.s32.totalorder %s612_s14, 0  ;;  %p62_p3 = scmp.ne.s32.totalorder %s596_s10, %s592_s9 }
   0xc   : > { %s822_s17 = smov (%p38_p0, %s36_s17), 0  ;;  %p63_p5 = scmp.eq.s32.totalorder %s385_s15, 0 }
   0xd   : > { %p676_p4 = por %p57_p2, %p56_p1  ;;  %s44_s20 = ssub.s32 %s608_s13, %s822_s17 }
   0xe   : > { %p116_p6 = scmp.eq.s32.totalorder %s385_s15, 1  ;;  %p47_p7 = scmp.eq.s32.totalorder %s44_s20, 0 }
   0xf   : > { %p682_p8 = por %p63_p5, %p62_p3  ;;  %p122_p10 = scmp.eq.s32.totalorder %s386_s16, 1 }
  0x10   : > { %p686_p9 = por %p116_p6, %p56_p1  ;;  %p419_p13 = scmp.lt.s32.totalorder %s612_s14, 2 }
  0x11   : > { %s691_s23 = scalar_select %p47_p7, %s600_s11, %s49_s18  }
  0x12   : > { %p693_p11 = por %p122_p10, %p62_p3  ;;  %s700_s25 = sand.u32 1, %s600_s11  }
  0x13   : > { %s389_s26 = sshll.u32 %s700_s25, 3  ;;  %s390_s27 = sshll.u32 %s608_s13, 7 }
  0x14   : > { %s152_s30 = scalar_lea.hbm %s806_s0, %s390_s27  ;;  %s146_s3 = scalar_lea.vmem [#allocation3], %s389_s26 }
  0x15   : > { %s154_s4 = sshll.u32 %s146_s3, 4  ;;  %p709_p0 = pnand %p419_p13, %p676_p4  ;;  %s155_s4 = int_to_ptr.vmem [resolvable:$true] %s154_s4 }
  0x16   : > { %p394_p1 = scmp.ge.s32.totalorder %s612_s14, 1  ;;  %p181_p2 = scmp.lt.s32.totalorder %s612_s14, 3 }
  0x17   : > { %s143_s6 = scalar_lea.sflag [#allocation4], %s700_s25  ;;  %p474_p3 = pneg %p709_p0 }
  0x18   : > { %s485_s7 = scalar_lea.vmem %s155_s4, 128  ;;  %s614_s8 = smov [#allocation3]  }
  0x19   : > { %p486_p5 = scmp.ne.s32.totalorder %s155_s4, %s485_s7  ;;  %s490_s15 = sshll.u32 %s614_s8, 4  ;;  %s491_s15 = int_to_ptr.vmem [resolvable:$false] %s490_s15 }
  0x1a   : > { %s492_s16 = scalar_lea.vmem %s491_s15, 256  ;;  %p493_p4 = scmp.lt.s32.totalorder %s155_s4, %s491_s15 }
  0x1b   : > { %p488_p6 = pnand %p486_p5, %p474_p3  ;;  %p494_p10 = scmp.lt.s32.totalorder %s492_s16, %s485_s7 }
  0x1d   : > { %p489_p7 = pneg %p488_p6  ;;  %p495_p13 = por %p494_p10, %p493_p4 }
  0x1f   : > { %p496_p12 = pnand %p495_p13, %p489_p7 }
  0x21   : > { %499 = shalt.err (!%p496_p12)
}
  0x22   : > { %411 = dma.hbm_to_vmem [thread:$0]  (!%p709_p0), %s152_s30, 128, %s155_s4, %s143_s6  }
  0x23   : > { %p727_p5 = pnand %p394_p1, %p181_p2  ;;  %s391_s19 = sshll.u32 %s700_s25, 4 }
  0x24   : > { %s401_s20 = sshll.u32 %s608_s13, 8  ;;  %s165_s29 = scalar_lea.vmem [#allocation6], %s391_s19 }
  0x25   : > { %s172_s28 = scalar_lea.hbm %s807_s1, %s401_s20  ;;  %s173_s3 = sshll.u32 %s165_s29, 4  ;;  %s174_s3 = int_to_ptr.vmem [resolvable:$true] %s173_s3 }
  0x26   : > { %s162_s7 = scalar_lea.sflag [#allocation7], %s700_s25  ;;  %s513_s8 = scalar_lea.vmem %s174_s3, 256 }
  0x27   : > { %p514_p12 = scmp.ne.s32.totalorder %s174_s3, %s513_s8  ;;  %s615_s30 = smov [#allocation6]  }
  0x28   : > { %s518_s4 = sshll.u32 %s615_s30, 4  ;;  %s519_s4 = int_to_ptr.vmem [resolvable:$false] %s518_s4 }
  0x29   : > { %p516_p6 = pnand %p514_p12, %p474_p3  ;;  %s520_s6 = scalar_lea.vmem %s519_s4, 512 }
  0x2a   : > { %p521_p1 = scmp.lt.s32.totalorder %s174_s3, %s519_s4  ;;  %p522_p2 = scmp.lt.s32.totalorder %s520_s6, %s513_s8 }
  0x2b   : > { %p517_p7 = pneg %p516_p6 }
  0x2c   : > { %p523_p4 = por %p522_p2, %p521_p1 }
  0x2e   : > { %p524_p10 = pnand %p523_p4, %p517_p7 }
  0x30   : > { %527 = shalt.err (!%p524_p10)
}
  0x31   : > { %s616_s15 = smov 128   ;;  %s617_s16 = smov 8  }
  0x32   : > { %414 = dma.hbm_to_vmem [thread:$0]  (!%p709_p0), %s172_s28, 256, %s174_s3, %s162_s7, %s616_s15, %s616_s15, %s617_s16  }
  0x33   : > { %185 = sbr.rel (%p727_p5) target bundleno = 102 (0x66), region = 28  ;;  %s745_s25 = sand.u32 (!%p727_p5), 1, %s596_s10  }
  0x34   : > { %s395_s19 = sshll.u32 (!%p727_p5), %s745_s25, 3  ;;  %s188_s20 = scalar_lea.sflag (!%p727_p5), [#allocation4], %s745_s25 }
  0x35   : > { %s191_s26 = scalar_lea.vmem (!%p727_p5), [#allocation3], %s395_s19 }
  0x38   : > { %579 = dma.done.wait (%p682_p8), %s188_s20, 128  }
  0x39   : > { %581 = vsyncadd (%p682_p8), %s188_s20, 4294967168  ;;  %s396_s5 = sshll.u32 %s745_s25, 4  ;;  %s197_s18 = scalar_lea.sflag [#allocation7], %s745_s25 }
  0x3a   : > { %s200_s27 = scalar_lea.vmem [#allocation6], %s396_s5 }
  0x3b   : > { %583 = dma.done.wait (%p682_p8), %s197_s18, 256  }
  0x3c   : > { %585 = vsyncadd (%p682_p8), %s197_s18, 4294967040  ;;  %v618_v0 = vmov 0.0   ;;  %v238_v1 = vld [vmem:[%s191_s26] sm:$0xff]  ;;  %v239_v2 = vld [vmem:[%s200_s27] sm:$0xff]  ;;  %s224_s21 = scalar_lea.vmem [#allocation8], %s745_s25  ;;  %s398_s29 = sshll.u32 %s604_s12, 4 }
  0x3d   : > { %229 = vst [vmem:[#allocation2] sm:$0x1] %v618_v0  ;;  %v397_v3 = vld [vmem:[%s200_s27 + $0x8] sm:$0xff]  ;;  %v243_v4 = vsub.f32 %v238_v1, %v239_v2  ;;  %s279_s28 = sshll.u32 %s224_s21, 4  ;;  %s277_s8 = scalar_lea.hbm %s808_s2, %s398_s29  ;;  %s761_s28 = int_to_ptr.vmem [resolvable:$true] %s279_s28 }
  0x3e   : > { %s265_s30 = scalar_lea.sflag [#allocation5], %s745_s25  ;;  %s528_s4 = scalar_lea.vmem %s761_s28, 16 }
  0x3f   : > { %v244_v5 = vmul.f32 %v397_v3, %v243_v4  ;;  %p529_p8 = scmp.ne.s32.totalorder %s761_s28, %s528_s4  ;;  %s619_s6 = smov [#allocation8]  }
  0x40   : > { %s532_s15 = sshll.u32 %s619_s6, 4  ;;  %s533_s15 = int_to_ptr.vmem [resolvable:$false] %s532_s15 }
  0x41   : > { %v245_v6 = vmul.f32 %v244_v5, %v243_v4  ;;  %p530_p0 = pnand %p529_p8, %p686_p9  ;;  %s534_s12 = scalar_lea.vmem %s533_s15, 32 }
  0x42   : > { %p535_p13 = scmp.lt.s32.totalorder %s761_s28, %s533_s15  ;;  %p536_p5 = scmp.lt.s32.totalorder %s534_s12, %s528_s4 }
  0x43   : > { %v251_v7 = vrot.slane %v245_v6, 4  ;;  %p531_p3 = pneg %p530_p0 }
  0x44   : > { %v250_v12 = vld [vmem:[#allocation2] sm:$0x1]  ;;  %p537_p12 = por %p536_p5, %p535_p13 }
  0x45   : > { %v252_v8 = vadd.f32 %v251_v7, %v245_v6 }
  0x46   : > { %p538_p6 = pnand %p537_p12, %p531_p3 }
  0x47   : > { %v253_v9 = vrot.slane %v252_v8, 2 }
  0x49   : > { %v254_v10 = vadd.f32 %v253_v9, %v252_v8 }
  0x4b   : > { %v255_v11 = vrot.slane %v254_v10, 1 }
  0x4d   : > { %v256_v13 = vadd.f32 %v255_v11, %v254_v10 }
  0x4f   : > { %v257_v14 = vadd.f32 %v256_v13, %v250_v12 }
  0x51   : > { %258 = vst [vmem:[#allocation2] sm:$0x1] %v257_v14 }
  0x58   : > { %v262_v15 = vld [vmem:[#allocation2] sm:$0x1] }
  0x59   : > { %263 = vst [vmem:[%s224_s21] sm:$0x1] %v262_v15 }
  0x5a   : > { %541 = shalt.err (!%p538_p6)
}
  0x5b   : > { %s542_s16 = scalar_lea.hbm %s277_s8, 16  ;;  %s546_s20 = scalar_lea.hbm %s808_s2, 32 }
  0x5c   : > { %p543_p7 = scmp.ne.s32.totalorder %s277_s8, %s542_s16  ;;  %p547_p4 = scmp.lt.s32.totalorder %s277_s8, %s808_s2 }
  0x5d   : > { %p548_p10 = scmp.lt.s32.totalorder %s546_s20, %s542_s16 }
  0x5e   : > { %p544_p1 = pnand %p543_p7, %p686_p9 }
  0x5f   : > { %p549_p8 = por %p548_p10, %p547_p4 }
  0x60   : > { %p545_p2 = pneg %p544_p1 }
  0x62   : > { %p550_p0 = pnand %p549_p8, %p545_p2 }
  0x64   : > { %553 = shalt.err (!%p550_p0)
}
  0x65   : > { %406 = dma.vmem_to_hbm [thread:$0]  (%p686_p9), %s761_s28, 16, %s277_s8, %s265_s30  }
  0x66 PF: > { %s291_s18 = sand.u32 1, %s592_s9   ;;  %p815_p3 = scmp.ge.s32.totalorder %s612_s14, 2 }
  0x67   : > { %s292_s27 = scalar_lea.sflag [#allocation5], %s291_s18 }
  0x68   : > { %p416_p13 = pnand %p815_p3, %p693_p11 }
  0x6a   : > { %p417_p5 = pneg %p416_p13 }
  0x6c   : > { %587 = dma.done.wait (%p417_p5), %s292_s27, 16  }
  0x6d   : > { %589 = vsyncadd (%p417_p5), %s292_s27, 4294967280  ;;  %s21_s14 = sadd.s32 1, %s612_s14   ;;  %s816_s9 = smov %s596_s10 }
  0x6e   : > { %p18_p12 = scmp.ge.s32.totalorder %s21_s14, 4   ;;  %s817_s10 = smov %s600_s11 }
  0x6f   : > { %s818_s11 = smov %s691_s23  ;;  %s819_s12 = smov %s608_s13 }
  0x70   : > { %s820_s13 = smov %s822_s17  ;;  %20 = sbr.rel (!%p18_p12) target bundleno = 8 (0x8), region = 99 }
  0x75   :  { %296 = vsyncpa [#allocation4], 1 }
  0x76   :  { %298 = vsyncpa [#allocation4 + $0x1], 1 }
  0x77   :  { %299 = vsyncpa [#allocation7], 1 }
  0x78   :  { %301 = vsyncpa [#allocation7 + $0x1], 1 }
  0x79   :  { %302 = vsyncpa [#allocation5], 1 }
  0x7a   :  { %304 = vsyncpa [#allocation5 + $0x1], 1 }

</bundles_post_ra>
